<compile_context>
chip_gen: v6e
topology: v6e:2x2x1
jax: 0.10.0
libtpu: 0.0.40
codegen_flags: <defaults>
</compile_context>

<pallas_src>
import math
from functools import partial

import jax
import jax.numpy as jnp
from jax.experimental import pallas as pl
from jax.experimental.pallas import tpu as pltpu


# ----------------------------------------------------------------------------
# Generation-aware tiling limits and capability probes
# ----------------------------------------------------------------------------

def _tile_limits():
    try:
        kind = jax.devices()[0].device_kind.lower()
    except Exception:
        kind = ""
    small_mxu = any(tag in kind for tag in
                    ("v2", "v3", "v4", "v5 lite", "v5e", "v5lite"))
    return (128, 128) if small_mxu else (256, 256)


_MAX_TM, _MAX_TN = _tile_limits()


def _probe_buffered():
    if not hasattr(pl, "Buffered"):
        return False
    try:
        pl.BlockSpec((8, 128), lambda i, j, k: (i, k),
                     pipeline_mode=pl.Buffered(3))
        return True
    except Exception:
        return False


_HAS_BUFFERED = _probe_buffered()


def _spec(shape, index_map, buffered=False):
    if buffered and _HAS_BUFFERED:
        return pl.BlockSpec(shape, index_map, pipeline_mode=pl.Buffered(3))
    return pl.BlockSpec(shape, index_map)


def _pick_tm(m):
    # No M padding: full dim when small, else 256/128 with partial last block.
    return m if m <= _MAX_TM else _MAX_TM


def _pick_tn(n):
    # tn == N for small / non-128-multiple N (no padding, no output slicing).
    if n <= _MAX_TN:
        return n
    for cand in (256, 128):
        if cand <= _MAX_TN and n % cand == 0:
            return cand
    return n                        # fallback: full width (unused here)


def _pick_tk(k):
    if k <= 1024:
        return k                    # single reduction step, no K padding
    for cand in (512, 256, 128):
        if k % cand == 0:
            return cand
    return k                        # fallback: full-K (unused here)


# ----------------------------------------------------------------------------
# Pallas fused GEMM kernels: out = (A @ B) + bias (+ residual) (+ ReLU)
# ----------------------------------------------------------------------------

def _make_fullk_kernel(relu, with_res):
    """Single reduction step: no VMEM accumulator, epilogue on the dot result."""
    def _epilogue(acc, bias_ref, r_ref, o_ref):
        acc = acc + bias_ref[...]
        if r_ref is not None:
            acc = acc + r_ref[...].astype(jnp.float32)
        if relu:
            acc = jnp.maximum(acc, 0.0)
        o_ref[...] = acc.astype(o_ref.dtype)

    if with_res:
        def kernel(a_ref, b_ref, bias_ref, r_ref, o_ref):
            acc = jnp.dot(a_ref[...], b_ref[...],
                          preferred_element_type=jnp.float32)
            _epilogue(acc, bias_ref, r_ref, o_ref)
    else:
        def kernel(a_ref, b_ref, bias_ref, o_ref):
            acc = jnp.dot(a_ref[...], b_ref[...],
                          preferred_element_type=jnp.float32)
            _epilogue(acc, bias_ref, None, o_ref)
    return kernel


def _make_tiled_kernel(relu, with_res):
    """K-tiled GEMM with f32 VMEM accumulator and fused epilogue on last k."""
    def _body(a_ref, b_ref, bias_ref, r_ref, o_ref, acc_ref):
        @pl.when(pl.program_id(2) == 0)
        def _init():
            acc_ref[...] = jnp.zeros_like(acc_ref)

        acc_ref[...] += jnp.dot(a_ref[...], b_ref[...],
                                preferred_element_type=jnp.float32)

        @pl.when(pl.program_id(2) == pl.num_programs(2) - 1)
        def _fin():
            r = acc_ref[...] + bias_ref[...]
            if r_ref is not None:
                r = r + r_ref[...].astype(jnp.float32)
            if relu:
                r = jnp.maximum(r, 0.0)
            o_ref[...] = r.astype(o_ref.dtype)

    if with_res:
        def kernel(a_ref, b_ref, bias_ref, r_ref, o_ref, acc_ref):
            _body(a_ref, b_ref, bias_ref, r_ref, o_ref, acc_ref)
    else:
        def kernel(a_ref, b_ref, bias_ref, o_ref, acc_ref):
            _body(a_ref, b_ref, bias_ref, None, o_ref, acc_ref)
    return kernel


def fused_matmul(a, b, bias, relu, residual=None):
    """out = (a @ b) + bias (+ residual) (+ ReLU), bf16 output.

    a: (M, K) bf16, b: (K, N) bf16 (BN scale pre-folded), bias: (1, N) f32,
    residual: (M, N) bf16 or None.  f32 accumulation / epilogue.
    """
    M, K = a.shape
    _, N = b.shape
    tm, tn, tk = _pick_tm(M), _pick_tn(N), _pick_tk(K)
    with_res = residual is not None
    args = [a, b, bias] + ([residual] if with_res else [])

    if tk == K:
        # --- full-K: 2-D grid, no accumulator scratch ---------------------
        in_specs = [
            pl.BlockSpec((tm, K), lambda i, j: (i, 0)),
            pl.BlockSpec((K, tn), lambda i, j: (0, j)),
            pl.BlockSpec((1, tn), lambda i, j: (0, j)),
        ]
        if with_res:
            in_specs.append(pl.BlockSpec((tm, tn), lambda i, j: (i, j)))
        return pl.pallas_call(
            _make_fullk_kernel(relu, with_res),
            out_shape=jax.ShapeDtypeStruct((M, N), jnp.bfloat16),
            grid_spec=pltpu.PrefetchScalarGridSpec(
                num_scalar_prefetch=0,
                grid=(pl.cdiv(M, tm), pl.cdiv(N, tn)),
                in_specs=in_specs,
                out_specs=pl.BlockSpec((tm, tn), lambda i, j: (i, j)),
            ),
            compiler_params=pltpu.CompilerParams(
                dimension_semantics=("parallel", "parallel")),
        )(*args)

    # --- K-tiled: 3-D grid, deeper input pipelining when available --------
    in_specs = [
        _spec((tm, tk), lambda i, j, k: (i, k), buffered=True),
        _spec((tk, tn), lambda i, j, k: (k, j), buffered=True),
        pl.BlockSpec((1, tn), lambda i, j, k: (0, j)),
    ]
    if with_res:
        # k-invariant block index -> fetched once per (i, j) tile.
        in_specs.append(pl.BlockSpec((tm, tn), lambda i, j, k: (i, j)))
    return pl.pallas_call(
        _make_tiled_kernel(relu, with_res),
        out_shape=jax.ShapeDtypeStruct((M, N), jnp.bfloat16),
        grid_spec=pltpu.PrefetchScalarGridSpec(
            num_scalar_prefetch=0,
            grid=(pl.cdiv(M, tm), pl.cdiv(N, tn), K // tk),
            in_specs=in_specs,
            out_specs=pl.BlockSpec((tm, tn), lambda i, j, k: (i, j)),
            scratch_shapes=[pltpu.VMEM((tm, tn), jnp.float32)],
        ),
        compiler_params=pltpu.CompilerParams(
            dimension_semantics=("parallel", "parallel", "arbitrary")),
    )(*args)


# ----------------------------------------------------------------------------
# Direct temporal conv kernel (kernel (KT,1,1)): tap index as a grid axis,
# element-granular T offset via a block-size-1 dim.  No im2col staging.
# ----------------------------------------------------------------------------

def _make_temporal_kernel(relu):
    def kernel(a_ref, w_ref, bias_ref, o_ref, acc_ref):
        @pl.when(pl.program_id(3) == 0)
        def _init():
            acc_ref[...] = jnp.zeros_like(acc_ref)

        acc_ref[...] += jnp.dot(a_ref[...], w_ref[...],
                                preferred_element_type=jnp.float32)

        @pl.when(pl.program_id(3) == pl.num_programs(3) - 1)
        def _fin():
            r = acc_ref[...] + bias_ref[...]
            if relu:
                r = jnp.maximum(r, 0.0)
            o_ref[...] = r.astype(o_ref.dtype)
    return kernel


@partial(jax.jit, static_argnames=("stride_t", "pad_t", "relu"))
def conv3d_temporal(x, w, bias, *, stride_t, pad_t, relu):
    """Conv3d with kernel (KT,1,1), stride (st,1,1), padding (pt,0,0) + folded
    BN (+ReLU).  x: (N,T,H,W,C) bf16, w: (KT, C, Cout) bf16, bias: (1,Cout) f32.
    """
    N, T, H, W, C = x.shape
    KT, _, Cout = w.shape
    Tp = T + 2 * pad_t
    To = (Tp - KT) // stride_t + 1
    HW = H * W

    xp = jnp.pad(x, ((0, 0), (pad_t, pad_t), (0, 0), (0, 0), (0, 0))) \
        if pad_t else x
    xr = xp.reshape(N, Tp, HW, C)

    tm = _pick_tm(HW)
    tn = _pick_tn(Cout)
    grid = (N * To, pl.cdiv(HW, tm), pl.cdiv(Cout, tn), KT)

    out = pl.pallas_call(
        _make_temporal_kernel(relu),
        out_shape=jax.ShapeDtypeStruct((N, To, HW, Cout), jnp.bfloat16),
        grid_spec=pltpu.PrefetchScalarGridSpec(
            num_scalar_prefetch=0,
            grid=grid,
            in_specs=[
                # block size 1 (squeezed) along N and Tp -> element-granular
                # tap offset (t_out*stride + kt) directly in the index map.
                pl.BlockSpec((None, None, tm, C),
                             lambda g, m, j, kt: (g // To,
                                                  (g % To) * stride_t + kt,
                                                  m, 0)),
                pl.BlockSpec((None, C, tn), lambda g, m, j, kt: (kt, 0, j)),
                pl.BlockSpec((1, tn), lambda g, m, j, kt: (0, j)),
            ],
            out_specs=pl.BlockSpec((None, None, tm, tn),
                                   lambda g, m, j, kt: (g // To, g % To, m, j)),
            scratch_shapes=[pltpu.VMEM((tm, tn), jnp.float32)],
        ),
        compiler_params=pltpu.CompilerParams(
            dimension_semantics=("parallel", "parallel", "parallel",
                                 "arbitrary")),
    )(xr, w, bias)
    return out.reshape(N, To, H, W, Cout)


# ----------------------------------------------------------------------------
# Conv wrappers (pointwise / im2col) and MaxPool
# ----------------------------------------------------------------------------

@partial(jax.jit, static_argnames=("stride", "relu"))
def conv3d_pointwise(x, w2d, bias, *, stride, relu, residual=None):
    """1x1x1 conv + folded BN (+residual +ReLU).  No patch extraction."""
    N, T, H, W, Cin = x.shape
    st, sh, sw = stride
    To = (T - 1) // st + 1
    Ho = (H - 1) // sh + 1
    Wo = (W - 1) // sw + 1
    if stride != (1, 1, 1):
        x = x[:, :(To - 1) * st + 1:st,
              :(Ho - 1) * sh + 1:sh,
              :(Wo - 1) * sw + 1:sw, :]
    M = N * To * Ho * Wo
    Cout = w2d.shape[1]
    a = x.reshape(M, Cin)
    res = None if residual is None else residual.reshape(M, Cout)
    out = fused_matmul(a, w2d, bias, relu, res)
    return out.reshape(N, To, Ho, Wo, Cout)


@partial(jax.jit, static_argnames=("ksize", "stride", "padding", "relu"))
def conv3d_im2col(x, w2d, bias, *, ksize, stride, padding, relu):
    """General conv (spatial kernel > 1) + folded BN (+ReLU) via bf16 im2col.

    TODO(synk): remaining HBM im2col staging for (1,3,3)/(1,7,7)/(5,7,7) convs.
    """
    N, T, H, W, Cin = x.shape
    KT, KH, KW = ksize
    st, sh, sw = stride
    pt, ph, pw = padding
    To = (T + 2 * pt - KT) // st + 1
    Ho = (H + 2 * ph - KH) // sh + 1
    Wo = (W + 2 * pw - KW) // sw + 1
    M = N * To * Ho * Wo

    xp = jnp.pad(x, ((0, 0), (pt, pt), (ph, ph), (pw, pw), (0, 0)))
    cols = []
    for kt in range(KT):
        for kh in range(KH):
            for kw in range(KW):
                cols.append(xp[:, kt:kt + (To - 1) * st + 1:st,
                               kh:kh + (Ho - 1) * sh + 1:sh,
                               kw:kw + (Wo - 1) * sw + 1:sw, :])
    a = jnp.concatenate(cols, axis=-1).reshape(M, KT * KH * KW * Cin)
    out = fused_matmul(a, w2d, bias, relu)
    return out.reshape(N, To, Ho, Wo, w2d.shape[1])


@jax.jit
def maxpool_1x3x3_s122(x):
    """MaxPool3d(kernel=(1,3,3), stride=(1,2,2), padding=(0,1,1)) on NTHWC bf16.

    Fused plain-JAX pairwise max tree over the 9 shifted strided windows.
    """
    N, T, H, W, C = x.shape
    Ho = (H + 2 - 3) // 2 + 1
    Wo = (W + 2 - 3) // 2 + 1
    neg = jnp.finfo(x.dtype).min
    xp = jnp.pad(x, ((0, 0), (0, 0), (1, 1), (1, 1), (0, 0)),
                 constant_values=neg)
    wins = [xp[:, :, kh:kh + (Ho - 1) * 2 + 1:2,
               kw:kw + (Wo - 1) * 2 + 1:2, :]
            for kh in range(3) for kw in range(3)]
    while len(wins) > 1:
        nxt = [jnp.maximum(wins[i], wins[i + 1])
               for i in range(0, len(wins) - 1, 2)]
        if len(wins) % 2:
            nxt.append(wins[-1])
        wins = nxt
    return wins[0]


# ----------------------------------------------------------------------------
# Deterministic parameter construction (synthetic weights, Kaiming-style)
# ----------------------------------------------------------------------------

_ROOT_KEY = jax.random.PRNGKey(0)
_key_counter = [0]
_BN_EPS = 1e-5
EXPANSION = 4                      # Bottleneck3d expansion (depth=50)
STAGE_BLOCKS = (3, 4, 6, 3)        # ResNet-50
SPATIAL_STRIDES = (1, 2, 2, 2)
TEMPORAL_STRIDES = (1, 1, 1, 1)


def _next_key():
    _key_counter[0] += 1
    return jax.random.fold_in(_ROOT_KEY, _key_counter[0])


def make_conv(cin, cout, ksize, stride, padding, relu, with_bn=True):
    kt, kh, kw = ksize
    fan_in = cin * kt * kh * kw
    std = math.sqrt(2.0 / fan_in)
    w = jax.random.normal(_next_key(), (kt, kh, kw, cin, cout),
                          jnp.float32) * std
    if with_bn:
        # inference-mode BN with gamma=1, beta=0, running_mean=0, running_var=1,
        # folded into the weights (scale) and bias.
        scale = jnp.full((cout,), 1.0 / math.sqrt(1.0 + _BN_EPS), jnp.float32)
    else:
        scale = jnp.ones((cout,), jnp.float32)
    bias = jnp.zeros((1, cout), jnp.float32)
    w = w * scale                              # fold BN scale into weights

    if ksize == (1, 1, 1):
        kind, wf = "pointwise", w.reshape(cin, cout)
    elif (kh == 1 and kw == 1 and stride[1] == 1 and stride[2] == 1
          and padding[1] == 0 and padding[2] == 0):
        kind, wf = "temporal", w.reshape(kt, cin, cout)
    else:
        kind, wf = "im2col", w.reshape(kt * kh * kw * cin, cout)

    return dict(kind=kind, w=wf.astype(jnp.bfloat16), bias=bias,
                ksize=tuple(ksize), stride=tuple(stride),
                padding=tuple(padding), relu=relu)


def apply_conv(x, p, residual=None, relu=None):
    relu = p["relu"] if relu is None else relu
    kind = p["kind"]
    if kind == "pointwise":
        return conv3d_pointwise(x, p["w"], p["bias"], stride=p["stride"],
                                relu=relu, residual=residual)
    if kind == "temporal":
        return conv3d_temporal(x, p["w"], p["bias"], stride_t=p["stride"][0],
                               pad_t=p["padding"][0], relu=relu)
    return conv3d_im2col(x, p["w"], p["bias"], ksize=p["ksize"],
                         stride=p["stride"], padding=p["padding"], relu=relu)


def make_bottleneck(inplanes, planes, spatial_stride, temporal_stride, inflate):
    # style='pytorch', inflate_style='3x1x1'
    if inflate:
        c1_k, c1_p = (3, 1, 1), (1, 0, 0)
    else:
        c1_k, c1_p = (1, 1, 1), (0, 0, 0)
    conv1 = make_conv(inplanes, planes, c1_k, (1, 1, 1), c1_p, relu=True)
    conv2 = make_conv(planes, planes, (1, 3, 3),
                      (temporal_stride, spatial_stride, spatial_stride),
                      (0, 1, 1), relu=True)
    conv3 = make_conv(planes, planes * EXPANSION, (1, 1, 1), (1, 1, 1),
                      (0, 0, 0), relu=False)
    downsample = None
    if spatial_stride != 1 or inplanes != planes * EXPANSION:
        downsample = make_conv(inplanes, planes * EXPANSION, (1, 1, 1),
                               (temporal_stride, spatial_stride, spatial_stride),
                               (0, 0, 0), relu=False)
    return dict(conv1=conv1, conv2=conv2, conv3=conv3, downsample=downsample)


def build_pathway(base_channels, conv1_kernel, inflate, lateral_inplanes,
                  in_channels=3):
    params = {}
    params["conv1"] = make_conv(
        in_channels, base_channels, conv1_kernel, (1, 2, 2),
        tuple((k - 1) // 2 for k in conv1_kernel), relu=True)
    inplanes = base_channels
    layers = []
    for i, nblocks in enumerate(STAGE_BLOCKS):
        planes = base_channels * 2 ** i
        blocks = []
        for b in range(nblocks):
            b_in = (inplanes + lateral_inplanes[i]) if b == 0 \
                else planes * EXPANSION
            s_stride = SPATIAL_STRIDES[i] if b == 0 else 1
            t_stride = TEMPORAL_STRIDES[i] if b == 0 else 1
            blocks.append(make_bottleneck(b_in, planes, s_stride, t_stride,
                                          inflate[i]))
        layers.append(blocks)
        inplanes = planes * EXPANSION
    params["layers"] = layers
    return params


def build_slowfast(speed_ratio=8, channel_ratio=8, fusion_kernel=7,
                   lateral_infl=2):
    # Slow pathway: depth=50, lateral=True, conv1_kernel=(1,7,7), inflate=(0,0,1,1)
    base = 64
    slow_lateral_inplanes = []
    for i in range(4):
        planes = base * 2 ** i * (EXPANSION // 2) ** (i > 0)
        slow_lateral_inplanes.append(planes * lateral_infl // channel_ratio)
    slow = build_pathway(base, (1, 7, 7), (0, 0, 1, 1), slow_lateral_inplanes)

    # Lateral fusion convs (conv only: bias=False, no norm, no act).
    lat_kw = dict(ksize=(fusion_kernel, 1, 1), stride=(speed_ratio, 1, 1),
                  padding=((fusion_kernel - 1) // 2, 0, 0),
                  relu=False, with_bn=False)
    slow["conv1_lateral"] = make_conv(base // channel_ratio,
                                      base * lateral_infl // channel_ratio,
                                      **lat_kw)
    laterals = []
    for i in range(3):  # layer1_lateral, layer2_lateral, layer3_lateral
        inp = base * 2 ** i * EXPANSION
        laterals.append(make_conv(inp // channel_ratio,
                                  inp * lateral_infl // channel_ratio,
                                  **lat_kw))
    slow["laterals"] = laterals

    # Fast pathway: depth=50, lateral=False, base_channels=8, conv1_kernel=(5,7,7)
    fast = build_pathway(8, (5, 7, 7), (1, 1, 1, 1), [0, 0, 0, 0])
    return dict(slow=slow, fast=fast)


# ----------------------------------------------------------------------------
# Forward pass (mirrors ResNet3dSlowFast.forward)
# ----------------------------------------------------------------------------

def _temporal_nearest_downsample(x, factor):
    """nn.functional.interpolate(mode='nearest', scale_factor=(1/factor,1,1))."""
    if factor == 1:
        return x
    T = x.shape[1]
    return x[:, ::factor][:, :T // factor]


def bottleneck_forward(x, blk):
    out = apply_conv(x, blk["conv1"])
    out = apply_conv(out, blk["conv2"])
    identity = x if blk["downsample"] is None \
        else apply_conv(x, blk["downsample"])
    # conv3 + BN + residual add + ReLU fused into one Pallas GEMM epilogue.
    return apply_conv(out, blk["conv3"], residual=identity, relu=True)


def slowfast_forward(params, x_ncthw, resample_rate=8, speed_ratio=8):
    # NCTHW -> NTHWC, bf16 activations end-to-end (f32 accumulation in kernels).
    x = jnp.transpose(x_ncthw, (0, 2, 3, 4, 1)).astype(jnp.bfloat16)
    slow, fast = params["slow"], params["fast"]

    # slow stem
    x_slow = _temporal_nearest_downsample(x, resample_rate)
    x_slow = apply_conv(x_slow, slow["conv1"])
    x_slow = maxpool_1x3x3_s122(x_slow)

    # fast stem
    x_fast = _temporal_nearest_downsample(x, resample_rate // speed_ratio)
    x_fast = apply_conv(x_fast, fast["conv1"])
    x_fast = maxpool_1x3x3_s122(x_fast)

    # stem lateral fusion
    lat = apply_conv(x_fast, slow["conv1_lateral"])
    x_slow = jnp.concatenate([x_slow, lat], axis=-1)

    for i in range(4):
        for blk in slow["layers"][i]:
            x_slow = bottleneck_forward(x_slow, blk)
        for blk in fast["layers"][i]:
            x_fast = bottleneck_forward(x_fast, blk)
        if i != 3:
            lat = apply_conv(x_fast, slow["laterals"][i])
            x_slow = jnp.concatenate([x_slow, lat], axis=-1)

    to_ncthw = lambda y: jnp.transpose(y, (0, 4, 1, 2, 3)).astype(jnp.float32)
    return to_ncthw(x_slow), to_ncthw(x_fast)


# ----------------------------------------------------------------------------

if __name__ == "__main__":
    key = jax.random.PRNGKey(0)
    N, Cin, T, H, W = 1, 3, 8, 32, 32      # small NCTHW video clip
    x = jax.random.normal(key, (N, Cin, T, H, W), jnp.float32)

    params = build_slowfast()
    x_slow, x_fast = slowfast_forward(params, x)
    x_slow, x_fast = jax.block_until_ready((x_slow, x_fast))

    assert x_slow.shape == (N, 2048, 1, 1, 1), x_slow.shape
    assert x_fast.shape == (N, 256, 8, 1, 1), x_fast.shape
    assert bool(jnp.all(jnp.isfinite(x_slow))) and bool(jnp.all(jnp.isfinite(x_fast)))
    print("KERNEL_OK")
</pallas_src>

<mosaic_0001>
module attributes {stable_mosaic.version = 11 : i64} {
  func.func @kernel(%arg0: i32, %arg1: i32, %arg2: memref<256x147xbf16, #tpu.memory_space<vmem>>, %arg3: memref<147x64xbf16, #tpu.memory_space<vmem>>, %arg4: memref<1x64xf32, #tpu.memory_space<vmem>>, %arg5: memref<256x64xbf16, #tpu.memory_space<vmem>>) attributes {dimension_semantics = [#tpu.dimension_semantics<parallel>, #tpu.dimension_semantics<parallel>], iteration_bounds = array<i64: 1, 1>, scalar_prefetch = 0 : i64, scratch_operands = 0 : i64, tpu.core_type = #tpu.core_type<tc>, window_params = [{transform_indices = @transform_0, window_bounds = array<i64: 256, 147>}, {transform_indices = @transform_1, window_bounds = array<i64: 147, 64>}, {transform_indices = @transform_2, window_bounds = array<i64: 1, 64>}, {transform_indices = @transform_3, window_bounds = array<i64: 256, 64>}]} {
    %c0 = arith.constant 0 : index
    %c0_0 = arith.constant 0 : index
    %0 = vector.load %arg2[%c0, %c0_0] : memref<256x147xbf16, #tpu.memory_space<vmem>>, vector<256x147xbf16>
    %c0_1 = arith.constant 0 : index
    %c0_2 = arith.constant 0 : index
    %1 = vector.load %arg3[%c0_1, %c0_2] : memref<147x64xbf16, #tpu.memory_space<vmem>>, vector<147x64xbf16>
    %cst = arith.constant dense<0.000000e+00> : vector<256x64xf32>
    %2 = tpu.matmul %0, %1, %cst {dimension_numbers = #tpu.dot_dimension_numbers<[1], [0], [0], [1], [0, 0, 1, 1], [], []>} : vector<256x147xbf16>, vector<147x64xbf16>, vector<256x64xf32> -> vector<256x64xf32>
    %c0_3 = arith.constant 0 : index
    %c0_4 = arith.constant 0 : index
    %3 = vector.load %arg4[%c0_3, %c0_4] : memref<1x64xf32, #tpu.memory_space<vmem>>, vector<1x64xf32>
    %4 = vector.broadcast %3 : vector<1x64xf32> to vector<256x64xf32>
    %5 = arith.addf %2, %4 : vector<256x64xf32>
    %cst_5 = arith.constant 0.000000e+00 : f32
    %6 = vector.broadcast %cst_5 : f32 to vector<256x64xf32>
    %7 = arith.maximumf %5, %6 : vector<256x64xf32>
    %8 = arith.truncf %7 : vector<256x64xf32> to vector<256x64xbf16>
    %c0_6 = arith.constant 0 : index
    %c0_7 = arith.constant 0 : index
    %9 = vector.load %arg5[%c0_6, %c0_7] : memref<256x64xbf16, #tpu.memory_space<vmem>>, vector<256x64xbf16>
    tpu.vector_store %arg5[%c0_6, %c0_7], %8 {strides = array<i32>} : memref<256x64xbf16, #tpu.memory_space<vmem>>, vector<256x64xbf16>,
    return
  }
  func.func @transform_0(%arg0: i32, %arg1: i32) -> (i32, i32) {
    %c0_i32 = arith.constant 0 : i32
    %c0_i32_0 = arith.constant 0 : i32
    return %arg0, %c0_i32 : i32, i32
  }
  func.func @transform_1(%arg0: i32, %arg1: i32) -> (i32, i32) {
    %c0_i32 = arith.constant 0 : i32
    %c0_i32_0 = arith.constant 0 : i32
    return %c0_i32, %arg1 : i32, i32
  }
  func.func @transform_2(%arg0: i32, %arg1: i32) -> (i32, i32) {
    %c0_i32 = arith.constant 0 : i32
    %c0_i32_0 = arith.constant 0 : i32
    return %c0_i32, %arg1 : i32, i32
  }
  func.func @transform_3(%arg0: i32, %arg1: i32) -> (i32, i32) {
    %c0_i32 = arith.constant 0 : i32
    return %arg0, %arg1 : i32, i32
  }
}

</mosaic_0001>

<bundles_post_ra>
// kernel: conv3d_im2col.1
= control target key start
LH: loop header
LB: loop body
LE: loop exit
PB: predicated region body
PF: predicated region fallthrough
CT: control target
= control target key end

     0   :  { %v929_v1 = vmov 0   ;;  %vm275_vm0 = vcmask 154624   ;;  %vm324_vm1 = vcmask 1040384   ;;  %vm325_vm2 = vcmask 1041408   ;;  %s1168_s0 = inlined_call_operand.vmem [shape: bf16[256,147], index: 0, kind: input, shape index: {}]   ;;  %s1169_s1 = inlined_call_operand.vmem [shape: bf16[147,64], index: 1, kind: input, shape index: {}]   ;;  %s1170_s2 = inlined_call_operand.vmem [shape: f32[1,64], index: 2, kind: input, shape index: {}]   ;;  %s1171_s3 = inlined_call_operand.hbm [shape: bf16[256,64], index: 3, kind: output, shape index: {}]  }
   0x1   :  { %v849_v0 = vld [vmem:[%s1169_s1 + $0x38] sm:$0xff]   ;;  %331 = vmatprep.subr.bf16.mxu0 %v929_v1  ;;  %824 = vmatprep.subr.bf16.mxu1 %v929_v1  ;;  %v850_v2 = vld [vmem:[%s1169_s1 + $0x30] sm:$0xff]   ;;  %v851_v3 = vld [vmem:[%s1169_s1 + $0x28] sm:$0xff]   ;;  %v930_v10 = vmov 65535  }
   0x2   :  { %332 = vmatpush1.bf16.msra.mxu0 %v849_v0  ;;  %834 = vmatpush1.bf16.msra.mxu1 %v849_v0  ;;  %v852_v4 = vld [vmem:[%s1169_s1 + $0x20] sm:$0xff]   ;;  %v853_v7 = vld [vmem:[%s1169_s1 + $0x18] sm:$0xff]   ;;  %v854_v8 = vld [vmem:[%s1169_s1 + $0x10] sm:$0xff]   ;;  %v326_v11 = vsel %vm324_vm1, 4294967295, %v930_v10 }
   0x3   :  { %333 = vmatprep.subr.bf16.mxu0 %v929_v1  ;;  %825 = vmatprep.subr.bf16.mxu1 %v929_v1  ;;  %v861_v5 = vld [vmem:[%s1168_s0 + $0x4] ss:$8 sps:$4 sm:$0xff]   ;;  %v857_v13 = vld [vmem:[%s1169_s1 + $0x48] ss:$0 sps:$4 sm:$0x33]   ;;  %v327_v14 = vsel %vm325_vm2, %v326_v11, 0 }
   0x4   :  { %744 = vmatprep.mubr.msk.bf16.mxu0 %vm275_vm0, %v861_v5  ;;  %v864_v6 = vld [vmem:[%s1168_s0 + $0x84] ss:$8 sps:$4 sm:$0xff]   ;;  %v329_v15 = vand.u32 %v857_v13, %v327_v14 }
   0x5   :  { %752 = vmatprep.mubr.msk.bf16.mxu1 %vm275_vm0, %v864_v6  ;;  %v855_v9 = vld [vmem:[%s1169_s1 + $0x8] sm:$0xff]   ;;  %v856_v12 = vld [vmem:[%s1169_s1] sm:$0xff]  }
   0x6   :  { %334 = vmatpush1.bf16.msra.mxu0 %v850_v2  ;;  %835 = vmatpush1.bf16.msra.mxu1 %v850_v2 }
   0x7   :  { %335 = vmatprep.subr.bf16.mxu0 %v929_v1  ;;  %826 = vmatprep.subr.bf16.mxu1 %v929_v1 }
   0xa   :  { %336 = vmatpush1.bf16.msra.mxu0 %v851_v3  ;;  %836 = vmatpush1.bf16.msra.mxu1 %v851_v3 }
   0xb   :  { %337 = vmatprep.subr.bf16.mxu0 %v929_v1  ;;  %827 = vmatprep.subr.bf16.mxu1 %v929_v1 }
   0xe   :  { %338 = vmatpush1.bf16.msra.mxu0 %v852_v4  ;;  %837 = vmatpush1.bf16.msra.mxu1 %v852_v4 }
   0xf   :  { %339 = vmatprep.subr.bf16.mxu0 %v929_v1  ;;  %828 = vmatprep.subr.bf16.mxu1 %v929_v1 }
  0x12   :  { %340 = vmatpush1.bf16.msra.mxu0 %v853_v7  ;;  %838 = vmatpush1.bf16.msra.mxu1 %v853_v7 }
  0x13   :  { %341 = vmatprep.subr.bf16.mxu0 %v929_v1  ;;  %829 = vmatprep.subr.bf16.mxu1 %v929_v1 }
  0x16   :  { %342 = vmatpush1.bf16.msra.mxu0 %v854_v8  ;;  %839 = vmatpush1.bf16.msra.mxu1 %v854_v8 }
  0x17   :  { %343 = vmatprep.subr.bf16.mxu0 %v929_v1  ;;  %830 = vmatprep.subr.bf16.mxu1 %v929_v1 }
  0x1a   :  { %344 = vmatpush1.bf16.msra.mxu0 %v855_v9  ;;  %840 = vmatpush1.bf16.msra.mxu1 %v855_v9 }
  0x1b   :  { %345 = vmatprep.subr.bf16.mxu0 %v929_v1  ;;  %831 = vmatprep.subr.bf16.mxu1 %v929_v1 }
  0x1e   :  { %346 = vmatpush1.bf16.msra.mxu0 %v856_v12  ;;  %841 = vmatpush1.bf16.msra.mxu1 %v856_v12 }
  0x1f   :  { %359 = vmatprep.subr.bf16.mxu0 %v929_v1  ;;  %832 = vmatprep.subr.bf16.mxu1 %v929_v1 }
  0x20   :  { %8 = vsyncpa [#allocation3], 0  ;;  %v858_v16 = vld [vmem:[%s1169_s1 + $0x40] sm:$0xff]   ;;  %v865_v19 = vld [vmem:[%s1168_s0 + $0x14] ss:$8 sps:$4 sm:$0xff]   ;;  %vm652_vm3 = vcmask 519168  }
  0x21   :  { %v859_v17 = vld [vmem:[%s1168_s0] ss:$8 sps:$4 sm:$0xff]   ;;  %v867_v20 = vld [vmem:[%s1168_s0 + $0x94] ss:$8 sps:$4 sm:$0xff]   ;;  %v869_v21 = vld [vmem:[%s1168_s0 + $0x10] ss:$8 sps:$4 sm:$0xff]  }
  0x22   :  { %360 = vmatpush2.bf16.msra.mxu0 %v329_v15  ;;  %842 = vmatpush2.bf16.msra.mxu1 %v329_v15  ;;  %v862_v18 = vld [vmem:[%s1168_s0 + $0x80] ss:$8 sps:$4 sm:$0xff]   ;;  %v870_v22 = vld [vmem:[%s1168_s0 + $0x90] ss:$8 sps:$4 sm:$0xff]   ;;  %v871_v23 = vld [vmem:[%s1168_s0 + $0x24] ss:$8 sps:$4 sm:$0xff]  }
  0x23   :  { %361 = vmatprep.subr.bf16.mxu0 %v929_v1  ;;  %833 = vmatprep.subr.bf16.mxu1 %v929_v1  ;;  %v873_v24 = vld [vmem:[%s1168_s0 + $0xa4] ss:$8 sps:$4 sm:$0xff]   ;;  %v875_v25 = vld [vmem:[%s1168_s0 + $0x20] ss:$8 sps:$4 sm:$0xff]   ;;  %v877_v27 = vld [vmem:[%s1168_s0 + $0x34] ss:$8 sps:$4 sm:$0xff]  }
  0x24   :  { %v876_v26 = vld [vmem:[%s1168_s0 + $0xa0] ss:$8 sps:$4 sm:$0xff]   ;;  %v879_v28 = vld [vmem:[%s1168_s0 + $0xb4] ss:$8 sps:$4 sm:$0xff]   ;;  %v881_v29 = vld [vmem:[%s1168_s0 + $0x30] ss:$8 sps:$4 sm:$0xff]  }
  0x25   :  { %v882_v30 = vld [vmem:[%s1168_s0 + $0xb0] ss:$8 sps:$4 sm:$0xff]   ;;  %v883_v31 = vld [vmem:[%s1168_s0 + $0x44] ss:$8 sps:$4 sm:$0xff]   ;;  %v887_v33 = vld [vmem:[%s1168_s0 + $0x40] ss:$8 sps:$4 sm:$0xff]  }
  0x26   :  { %362 = vmatpush2.bf16.msra.mxu0 %v858_v16  ;;  %843 = vmatpush2.bf16.msra.mxu1 %v858_v16  ;;  %v885_v32 = vld [vmem:[%s1168_s0 + $0xc4] ss:$8 sps:$4 sm:$0xff]   ;;  %v888_v34 = vld [vmem:[%s1168_s0 + $0xc0] ss:$8 sps:$4 sm:$0xff]   ;;  %v889_v35 = vld [vmem:[%s1168_s0 + $0x54] ss:$8 sps:$4 sm:$0xff]  }
  0x27   :  { %v891_v36 = vld [vmem:[%s1168_s0 + $0xd4] ss:$8 sps:$4 sm:$0xff]   ;;  %v893_v37 = vld [vmem:[%s1168_s0 + $0x50] ss:$8 sps:$4 sm:$0xff]   ;;  %v895_v39 = vld [vmem:[%s1168_s0 + $0x64] ss:$8 sps:$4 sm:$0xff]  }
  0x28   :  { %v894_v38 = vld [vmem:[%s1168_s0 + $0xd0] ss:$8 sps:$4 sm:$0xff]   ;;  %v897_v40 = vld [vmem:[%s1168_s0 + $0xe4] ss:$8 sps:$4 sm:$0xff]   ;;  %v899_v41 = vld [vmem:[%s1168_s0 + $0x60] ss:$8 sps:$4 sm:$0xff]  }
  0x29   :  { %364 = vmatmul.mubr.bf16.vlgmr.msra.gmra.mxu0 %v859_v17  ;;  %428 = vmatmul.mubr.bf16.vlgmr.msra.gmra.mxu1 %v862_v18  ;;  %v900_v42 = vld [vmem:[%s1168_s0 + $0xe0] ss:$8 sps:$4 sm:$0xff]   ;;  %v901_v43 = vld [vmem:[%s1168_s0 + $0x74] ss:$8 sps:$4 sm:$0xff]   ;;  %v905_v45 = vld [vmem:[%s1168_s0 + $0x70] ss:$8 sps:$4 sm:$0xff]  }
  0x2a   :  { %745 = vmatprep.mubr.msk.bf16.mxu0 %vm275_vm0, %v865_v19  ;;  %753 = vmatprep.mubr.msk.bf16.mxu1 %vm275_vm0, %v867_v20  ;;  %v903_v44 = vld [vmem:[%s1168_s0 + $0xf4] ss:$8 sps:$4 sm:$0xff]   ;;  %v906_v46 = vld [vmem:[%s1168_s0 + $0xf0] ss:$8 sps:$4 sm:$0xff]   ;;  %v1099_v47 = vld [vmem:[%s1170_s2] ss:$0 sm:$0xff] }
  0x2b   :  { %s931_s0 = smov [#allocation2]  }
  0x2c   :  { %s690_s2 = sshll.u32 %s931_s0, 4  ;;  %s691_s2 = int_to_ptr.vmem [resolvable:$true] %s690_s2 }
  0x2d   :  { %s907_s15 = scalar_lea.vmem %s691_s2, 2048  ;;  %p912_p1 = scmp.lt.s32.totalorder %s691_s2, %s691_s2 }
  0x2e   :  { %p908_p0 = scmp.ne.s32.totalorder %s691_s2, %s907_s15  ;;  %p913_p2 = scmp.lt.s32.totalorder %s907_s15, %s907_s15 }
  0x30   :  { %p914_p3 = por %p913_p2, %p912_p1 }
  0x31   :  { %372 = vmatmul.mubr.bf16.gmra.mxu0 %v869_v21  ;;  %436 = vmatmul.mubr.bf16.gmra.mxu1 %v870_v22 }
  0x32   :  { %746 = vmatprep.mubr.msk.bf16.mxu0 %vm275_vm0, %v871_v23  ;;  %754 = vmatprep.mubr.msk.bf16.mxu1 %vm275_vm0, %v873_v24  ;;  %p915_p4 = pnand %p914_p3, %p908_p0 }
  0x39   :  { %380 = vmatmul.mubr.bf16.gmra.mxu0 %v875_v25  ;;  %444 = vmatmul.mubr.bf16.gmra.mxu1 %v876_v26 }
  0x3a   :  { %747 = vmatprep.mubr.msk.bf16.mxu0 %vm275_vm0, %v877_v27  ;;  %755 = vmatprep.mubr.msk.bf16.mxu1 %vm275_vm0, %v879_v28 }
  0x41   :  { %388 = vmatmul.mubr.bf16.gmra.mxu0 %v881_v29  ;;  %452 = vmatmul.mubr.bf16.gmra.mxu1 %v882_v30 }
  0x42   :  { %748 = vmatprep.mubr.msk.bf16.mxu0 %vm275_vm0, %v883_v31  ;;  %756 = vmatprep.mubr.msk.bf16.mxu1 %vm275_vm0, %v885_v32 }
  0x49   :  { %396 = vmatmul.mubr.bf16.gmra.mxu0 %v887_v33  ;;  %460 = vmatmul.mubr.bf16.gmra.mxu1 %v888_v34 }
  0x4a   :  { %749 = vmatprep.mubr.msk.bf16.mxu0 %vm275_vm0, %v889_v35  ;;  %757 = vmatprep.mubr.msk.bf16.mxu1 %vm275_vm0, %v891_v36 }
  0x51   :  { %404 = vmatmul.mubr.bf16.gmra.mxu0 %v893_v37  ;;  %468 = vmatmul.mubr.bf16.gmra.mxu1 %v894_v38 }
  0x52   :  { %750 = vmatprep.mubr.msk.bf16.mxu0 %vm275_vm0, %v895_v39  ;;  %758 = vmatprep.mubr.msk.bf16.mxu1 %vm275_vm0, %v897_v40 }
  0x59   :  { %412 = vmatmul.mubr.bf16.gmra.mxu0 %v899_v41  ;;  %476 = vmatmul.mubr.bf16.gmra.mxu1 %v900_v42 }
  0x5a   :  { %751 = vmatprep.mubr.msk.bf16.mxu0 %vm275_vm0, %v901_v43  ;;  %759 = vmatprep.mubr.msk.bf16.mxu1 %vm275_vm0, %v903_v44 }
  0x61   :  { %420 = vmatmul.mubr.bf16.gmra.mxu0 %v905_v45  ;;  %484 = vmatmul.mubr.bf16.gmra.mxu1 %v906_v46 }
  0xe9   :  { %v365_v48 = vpop.f32.mrf.mxu0  ;;  %v429_v49 = vpop.f32.mrf.mxu1 }
  0xea   :  { %v366_v50 = vadd.f32 %v1099_v47, %v365_v48  ;;  %v430_v51 = vadd.f32 %v1099_v47, %v429_v49 }
  0xeb   :  { %v367_v52 = vpop.f32.mrf.mxu0  ;;  %v431_v53 = vpop.f32.mrf.mxu1 }
  0xec   :  { %v492_v54 = vmax.f32 %v366_v50, 0.0  ;;  %v508_v55 = vmax.f32 %v430_v51, 0.0 }
  0xed   :  { %v368_v56 = vpop.f32.mrf.mxu0  ;;  %v432_v57 = vpop.f32.mrf.mxu1 }
  0xee   :  { %v792_v58 = vpack.c.bf16 %v492_v54, %v492_v54  ;;  %v808_v59 = vpack.c.bf16 %v508_v55, %v508_v55  ;;  %v369_v60 = vadd.f32 %v1099_v47, %v368_v56  ;;  %v433_v61 = vadd.f32 %v1099_v47, %v432_v57 }
  0xef   :  { %v370_v62 = vpop.f32.mrf.mxu0  ;;  %v434_v63 = vpop.f32.mrf.mxu1 }
  0xf0   :  { %653 = vst.msk [vmem:[#allocation2] sm:$0xf] %vm652_vm3, %v792_v58  ;;  %669 = vst.msk [vmem:[#allocation2 + $0x40] sm:$0xf] %vm652_vm3, %v808_v59  ;;  %v493_v0 = vmax.f32 %v369_v60, 0.0  ;;  %v509_v1 = vmax.f32 %v433_v61, 0.0 }
  0xf1   :  { %v373_v2 = vpop.f32.mrf.mxu0  ;;  %v437_v3 = vpop.f32.mrf.mxu1 }
  0xf2   :  { %v793_v4 = vpack.c.bf16 %v493_v0, %v493_v0  ;;  %v809_v5 = vpack.c.bf16 %v509_v1, %v509_v1  ;;  %v374_v6 = vadd.f32 %v1099_v47, %v373_v2  ;;  %v438_v7 = vadd.f32 %v1099_v47, %v437_v3 }
  0xf3   :  { %v375_v8 = vpop.f32.mrf.mxu0  ;;  %v439_v9 = vpop.f32.mrf.mxu1 }
  0xf4   :  { %654 = vst.msk [vmem:[#allocation2 + $0x4] sm:$0xf] %vm652_vm3, %v793_v4  ;;  %670 = vst.msk [vmem:[#allocation2 + $0x44] sm:$0xf] %vm652_vm3, %v809_v5  ;;  %v494_v10 = vmax.f32 %v374_v6, 0.0  ;;  %v510_v11 = vmax.f32 %v438_v7, 0.0 }
  0xf5   :  { %v376_v12 = vpop.f32.mrf.mxu0  ;;  %v440_v13 = vpop.f32.mrf.mxu1 }
  0xf6   :  { %v794_v14 = vpack.c.bf16 %v494_v10, %v494_v10  ;;  %v810_v15 = vpack.c.bf16 %v510_v11, %v510_v11  ;;  %v377_v16 = vadd.f32 %v1099_v47, %v376_v12  ;;  %v441_v17 = vadd.f32 %v1099_v47, %v440_v13 }
  0xf7   :  { %v378_v18 = vpop.f32.mrf.mxu0  ;;  %v442_v19 = vpop.f32.mrf.mxu1 }
  0xf8   :  { %655 = vst.msk [vmem:[#allocation2 + $0x8] sm:$0xf] %vm652_vm3, %v794_v14  ;;  %671 = vst.msk [vmem:[#allocation2 + $0x48] sm:$0xf] %vm652_vm3, %v810_v15  ;;  %v495_v20 = vmax.f32 %v377_v16, 0.0  ;;  %v511_v21 = vmax.f32 %v441_v17, 0.0 }
  0xf9   :  { %v381_v22 = vpop.f32.mrf.mxu0  ;;  %v445_v23 = vpop.f32.mrf.mxu1 }
  0xfa   :  { %v795_v24 = vpack.c.bf16 %v495_v20, %v495_v20  ;;  %v811_v25 = vpack.c.bf16 %v511_v21, %v511_v21  ;;  %v382_v26 = vadd.f32 %v1099_v47, %v381_v22  ;;  %v446_v27 = vadd.f32 %v1099_v47, %v445_v23 }
  0xfb   :  { %v383_v28 = vpop.f32.mrf.mxu0  ;;  %v447_v29 = vpop.f32.mrf.mxu1 }
  0xfc   :  { %656 = vst.msk [vmem:[#allocation2 + $0xc] sm:$0xf] %vm652_vm3, %v795_v24  ;;  %672 = vst.msk [vmem:[#allocation2 + $0x4c] sm:$0xf] %vm652_vm3, %v811_v25  ;;  %v496_v30 = vmax.f32 %v382_v26, 0.0  ;;  %v512_v31 = vmax.f32 %v446_v27, 0.0 }
  0xfd   :  { %v384_v32 = vpop.f32.mrf.mxu0  ;;  %v448_v33 = vpop.f32.mrf.mxu1 }
  0xfe   :  { %v796_v34 = vpack.c.bf16 %v496_v30, %v496_v30  ;;  %v812_v35 = vpack.c.bf16 %v512_v31, %v512_v31  ;;  %v385_v36 = vadd.f32 %v1099_v47, %v384_v32  ;;  %v449_v37 = vadd.f32 %v1099_v47, %v448_v33 }
  0xff   :  { %v386_v38 = vpop.f32.mrf.mxu0  ;;  %v450_v39 = vpop.f32.mrf.mxu1 }
 0x100   :  { %657 = vst.msk [vmem:[#allocation2 + $0x10] sm:$0xf] %vm652_vm3, %v796_v34  ;;  %673 = vst.msk [vmem:[#allocation2 + $0x50] sm:$0xf] %vm652_vm3, %v812_v35  ;;  %v497_v40 = vmax.f32 %v385_v36, 0.0  ;;  %v513_v41 = vmax.f32 %v449_v37, 0.0 }
 0x101   :  { %v389_v42 = vpop.f32.mrf.mxu0  ;;  %v453_v43 = vpop.f32.mrf.mxu1 }
 0x102   :  { %v797_v44 = vpack.c.bf16 %v497_v40, %v497_v40  ;;  %v813_v45 = vpack.c.bf16 %v513_v41, %v513_v41  ;;  %v390_v46 = vadd.f32 %v1099_v47, %v389_v42  ;;  %v454_v48 = vadd.f32 %v1099_v47, %v453_v43 }
 0x103   :  { %v391_v49 = vpop.f32.mrf.mxu0  ;;  %v455_v50 = vpop.f32.mrf.mxu1 }
 0x104   :  { %658 = vst.msk [vmem:[#allocation2 + $0x14] sm:$0xf] %vm652_vm3, %v797_v44  ;;  %674 = vst.msk [vmem:[#allocation2 + $0x54] sm:$0xf] %vm652_vm3, %v813_v45  ;;  %v498_v51 = vmax.f32 %v390_v46, 0.0  ;;  %v514_v52 = vmax.f32 %v454_v48, 0.0 }
 0x105   :  { %v392_v53 = vpop.f32.mrf.mxu0  ;;  %v456_v54 = vpop.f32.mrf.mxu1 }
 0x106   :  { %v798_v55 = vpack.c.bf16 %v498_v51, %v498_v51  ;;  %v814_v56 = vpack.c.bf16 %v514_v52, %v514_v52  ;;  %v393_v57 = vadd.f32 %v1099_v47, %v392_v53  ;;  %v457_v58 = vadd.f32 %v1099_v47, %v456_v54 }
 0x107   :  { %v394_v59 = vpop.f32.mrf.mxu0  ;;  %v458_v60 = vpop.f32.mrf.mxu1 }
 0x108   :  { %659 = vst.msk [vmem:[#allocation2 + $0x18] sm:$0xf] %vm652_vm3, %v798_v55  ;;  %675 = vst.msk [vmem:[#allocation2 + $0x58] sm:$0xf] %vm652_vm3, %v814_v56  ;;  %v499_v61 = vmax.f32 %v393_v57, 0.0  ;;  %v515_v62 = vmax.f32 %v457_v58, 0.0 }
 0x109   :  { %v397_v63 = vpop.f32.mrf.mxu0  ;;  %v461_v0 = vpop.f32.mrf.mxu1 }
 0x10a   :  { %v799_v1 = vpack.c.bf16 %v499_v61, %v499_v61  ;;  %v815_v2 = vpack.c.bf16 %v515_v62, %v515_v62  ;;  %v398_v3 = vadd.f32 %v1099_v47, %v397_v63  ;;  %v462_v4 = vadd.f32 %v1099_v47, %v461_v0 }
 0x10b   :  { %v399_v5 = vpop.f32.mrf.mxu0  ;;  %v463_v6 = vpop.f32.mrf.mxu1 }
 0x10c   :  { %660 = vst.msk [vmem:[#allocation2 + $0x1c] sm:$0xf] %vm652_vm3, %v799_v1  ;;  %676 = vst.msk [vmem:[#allocation2 + $0x5c] sm:$0xf] %vm652_vm3, %v815_v2  ;;  %v500_v7 = vmax.f32 %v398_v3, 0.0  ;;  %v516_v8 = vmax.f32 %v462_v4, 0.0 }
 0x10d   :  { %v400_v9 = vpop.f32.mrf.mxu0  ;;  %v464_v10 = vpop.f32.mrf.mxu1 }
 0x10e   :  { %v800_v11 = vpack.c.bf16 %v500_v7, %v500_v7  ;;  %v816_v12 = vpack.c.bf16 %v516_v8, %v516_v8  ;;  %v401_v13 = vadd.f32 %v1099_v47, %v400_v9  ;;  %v465_v14 = vadd.f32 %v1099_v47, %v464_v10 }
 0x10f   :  { %v402_v15 = vpop.f32.mrf.mxu0  ;;  %v466_v16 = vpop.f32.mrf.mxu1 }
 0x110   :  { %661 = vst.msk [vmem:[#allocation2 + $0x20] sm:$0xf] %vm652_vm3, %v800_v11  ;;  %677 = vst.msk [vmem:[#allocation2 + $0x60] sm:$0xf] %vm652_vm3, %v816_v12  ;;  %v501_v17 = vmax.f32 %v401_v13, 0.0  ;;  %v517_v18 = vmax.f32 %v465_v14, 0.0 }
 0x111   :  { %v405_v19 = vpop.f32.mrf.mxu0  ;;  %v469_v20 = vpop.f32.mrf.mxu1 }
 0x112   :  { %v801_v21 = vpack.c.bf16 %v501_v17, %v501_v17  ;;  %v817_v22 = vpack.c.bf16 %v517_v18, %v517_v18  ;;  %v406_v23 = vadd.f32 %v1099_v47, %v405_v19  ;;  %v470_v24 = vadd.f32 %v1099_v47, %v469_v20 }
 0x113   :  { %v407_v25 = vpop.f32.mrf.mxu0  ;;  %v471_v26 = vpop.f32.mrf.mxu1 }
 0x114   :  { %662 = vst.msk [vmem:[#allocation2 + $0x24] sm:$0xf] %vm652_vm3, %v801_v21  ;;  %678 = vst.msk [vmem:[#allocation2 + $0x64] sm:$0xf] %vm652_vm3, %v817_v22  ;;  %v502_v27 = vmax.f32 %v406_v23, 0.0  ;;  %v518_v28 = vmax.f32 %v470_v24, 0.0 }
 0x115   :  { %v408_v29 = vpop.f32.mrf.mxu0  ;;  %v472_v30 = vpop.f32.mrf.mxu1 }
 0x116   :  { %v802_v31 = vpack.c.bf16 %v502_v27, %v502_v27  ;;  %v818_v32 = vpack.c.bf16 %v518_v28, %v518_v28  ;;  %v409_v33 = vadd.f32 %v1099_v47, %v408_v29  ;;  %v473_v34 = vadd.f32 %v1099_v47, %v472_v30 }
 0x117   :  { %v410_v35 = vpop.f32.mrf.mxu0  ;;  %v474_v36 = vpop.f32.mrf.mxu1 }
 0x118   :  { %663 = vst.msk [vmem:[#allocation2 + $0x28] sm:$0xf] %vm652_vm3, %v802_v31  ;;  %679 = vst.msk [vmem:[#allocation2 + $0x68] sm:$0xf] %vm652_vm3, %v818_v32  ;;  %v503_v37 = vmax.f32 %v409_v33, 0.0  ;;  %v519_v38 = vmax.f32 %v473_v34, 0.0 }
 0x119   :  { %v413_v39 = vpop.f32.mrf.mxu0  ;;  %v477_v40 = vpop.f32.mrf.mxu1 }
 0x11a   :  { %v803_v41 = vpack.c.bf16 %v503_v37, %v503_v37  ;;  %v819_v42 = vpack.c.bf16 %v519_v38, %v519_v38  ;;  %v414_v43 = vadd.f32 %v1099_v47, %v413_v39  ;;  %v478_v44 = vadd.f32 %v1099_v47, %v477_v40 }
 0x11b   :  { %v415_v45 = vpop.f32.mrf.mxu0  ;;  %v479_v46 = vpop.f32.mrf.mxu1 }
 0x11c   :  { %664 = vst.msk [vmem:[#allocation2 + $0x2c] sm:$0xf] %vm652_vm3, %v803_v41  ;;  %680 = vst.msk [vmem:[#allocation2 + $0x6c] sm:$0xf] %vm652_vm3, %v819_v42  ;;  %v504_v48 = vmax.f32 %v414_v43, 0.0  ;;  %v520_v49 = vmax.f32 %v478_v44, 0.0 }
 0x11d   :  { %v416_v50 = vpop.f32.mrf.mxu0  ;;  %v480_v51 = vpop.f32.mrf.mxu1 }
 0x11e   :  { %v804_v52 = vpack.c.bf16 %v504_v48, %v504_v48  ;;  %v820_v53 = vpack.c.bf16 %v520_v49, %v520_v49  ;;  %v417_v54 = vadd.f32 %v1099_v47, %v416_v50  ;;  %v481_v55 = vadd.f32 %v1099_v47, %v480_v51 }
 0x11f   :  { %v418_v56 = vpop.f32.mrf.mxu0  ;;  %v482_v57 = vpop.f32.mrf.mxu1 }
 0x120   :  { %665 = vst.msk [vmem:[#allocation2 + $0x30] sm:$0xf] %vm652_vm3, %v804_v52  ;;  %681 = vst.msk [vmem:[#allocation2 + $0x70] sm:$0xf] %vm652_vm3, %v820_v53  ;;  %v505_v58 = vmax.f32 %v417_v54, 0.0  ;;  %v521_v59 = vmax.f32 %v481_v55, 0.0 }
 0x121   :  { %v421_v60 = vpop.f32.mrf.mxu0  ;;  %v485_v61 = vpop.f32.mrf.mxu1 }
 0x122   :  { %v805_v62 = vpack.c.bf16 %v505_v58, %v505_v58  ;;  %v821_v63 = vpack.c.bf16 %v521_v59, %v521_v59  ;;  %v422_v0 = vadd.f32 %v1099_v47, %v421_v60  ;;  %v486_v1 = vadd.f32 %v1099_v47, %v485_v61 }
 0x123   :  { %v423_v2 = vpop.f32.mrf.mxu0  ;;  %v487_v3 = vpop.f32.mrf.mxu1 }
 0x124   :  { %666 = vst.msk [vmem:[#allocation2 + $0x34] sm:$0xf] %vm652_vm3, %v805_v62  ;;  %682 = vst.msk [vmem:[#allocation2 + $0x74] sm:$0xf] %vm652_vm3, %v821_v63  ;;  %v506_v4 = vmax.f32 %v422_v0, 0.0  ;;  %v522_v5 = vmax.f32 %v486_v1, 0.0 }
 0x125   :  { %v424_v6 = vpop.f32.mrf.mxu0  ;;  %v488_v7 = vpop.f32.mrf.mxu1 }
 0x126   :  { %v806_v8 = vpack.c.bf16 %v506_v4, %v506_v4  ;;  %v822_v9 = vpack.c.bf16 %v522_v5, %v522_v5  ;;  %v425_v10 = vadd.f32 %v1099_v47, %v424_v6  ;;  %v489_v11 = vadd.f32 %v1099_v47, %v488_v7 }
 0x127   :  { %v426_v12 = vpop.f32.mrf.mxu0  ;;  %v490_v13 = vpop.f32.mrf.mxu1 }
 0x128   :  { %667 = vst.msk [vmem:[#allocation2 + $0x38] sm:$0xf] %vm652_vm3, %v806_v8  ;;  %683 = vst.msk [vmem:[#allocation2 + $0x78] sm:$0xf] %vm652_vm3, %v822_v9  ;;  %v507_v14 = vmax.f32 %v425_v10, 0.0  ;;  %v523_v15 = vmax.f32 %v489_v11, 0.0 }
 0x12a   :  { %v807_v16 = vpack.c.bf16 %v507_v14, %v507_v14  ;;  %v823_v17 = vpack.c.bf16 %v523_v15, %v523_v15 }
 0x12c   :  { %668 = vst.msk [vmem:[#allocation2 + $0x3c] sm:$0xf] %vm652_vm3, %v807_v16  ;;  %684 = vst.msk [vmem:[#allocation2 + $0x7c] sm:$0xf] %vm652_vm3, %v823_v17 }
 0x12d   :  { %918 = shalt.err (!%p915_p4)
}
 0x12e   :  { %s932_s16 = smov 64   ;;  %s933_s1 = smov 4  }
 0x12f   :  { %696 = dma.vmem_to_hbm [thread:$0]  %s691_s2, 2048, %s1171_s3, [#allocation3], %s932_s16, %s932_s16, %s933_s1  }
 0x130   :  { %927 = dma.done.wait [#allocation3], 2048  }
 0x131   :  { %928 = vsyncadd [#allocation3], 4294965248 }
 0x132   :  { %700 = vsyncpa [#allocation3], 1 }

</bundles_post_ra>
